<compile_context>
chip_gen: v7x
topology: tpu7x:2x2x1
jax: 0.10.0
libtpu: 0.0.40
codegen_flags: <defaults>
</compile_context>

<pallas_src>
import functools

import jax
import jax.numpy as jnp
import numpy as np
from jax.experimental import pallas as pl
from jax.experimental.pallas import tpu as pltpu


def _round_up(v, m):
    return ((v + m - 1) // m) * m


def _dense_normalized_adjacency(pd_edge_index, n_prot, n_drug, edge_weight=None):
    """GCN normalization D^{-1/2}(A + I)D^{-1/2} as a dense (N, N) matrix.

    Mirrors myGCN.norm(): drug targets are shifted by n_prot, remaining self-loops
    are added with weight 1, and degrees come from a scatter_add over the target
    index.  The bipartite protein->drug graph has no pre-existing self loops, so
    `A + I` is exact.
    """
    # TODO(synk): the edge scatter_add / add_remaining_self_loops bookkeeping has no
    # clean Pallas equivalent; it is done once here in plain JAX (the original module
    # caches this result anyway, cached=True).
    n_nodes = n_prot + n_drug
    row = pd_edge_index[0]                     # sources: protein indices
    col = pd_edge_index[1] + n_prot            # targets: drug indices, shifted
    if edge_weight is None:
        edge_weight = jnp.ones((pd_edge_index.shape[1],), jnp.float32)
    adj = jnp.zeros((n_nodes, n_nodes), jnp.float32)
    adj = adj.at[col, row].add(edge_weight.astype(jnp.float32))
    adj = adj + jnp.eye(n_nodes, dtype=jnp.float32)        # add_remaining_self_loops
    deg = adj.sum(axis=1)                                   # scatter_add over col
    deg_inv_sqrt = jnp.where(deg > 0.0, jax.lax.rsqrt(deg), 0.0)
    return deg_inv_sqrt[:, None] * adj * deg_inv_sqrt[None, :]


def _pd_gcn_kernel(a_ref, x_ref, w_ref, b_ref, o_ref, acc_ref):
    """Fused GCN tile.

    Per grid step (i, j, l):
        xw   = X[l-block, :] @ W[:, j-block]         (MXU, f32 accumulate)
        acc += A_norm[i-block, l-block] @ xw         (MXU, f32 VMEM accumulator)
    Epilogue on the last l-step: + bias, ReLU, cast, lane-dense store.
    """
    l = pl.program_id(2)

    @pl.when(l == 0)
    def _init():
        acc_ref[...] = jnp.zeros_like(acc_ref)

    xw = jnp.dot(x_ref[...], w_ref[...], preferred_element_type=jnp.float32)
    acc_ref[...] += jnp.dot(a_ref[...], xw, preferred_element_type=jnp.float32)

    @pl.when(l == pl.num_programs(2) - 1)
    def _epilogue():
        out = acc_ref[...] + b_ref[...]                              # myGCN.update bias
        o_ref[...] = jnp.maximum(out, 0.0).astype(o_ref.dtype)       # F.relu (PD)


@functools.partial(jax.jit, static_argnames=("n_drug", "tm", "tn", "tl"))
def pd_forward(x, pd_edge_index, weight, bias, d_feat, *, n_drug,
               edge_weight=None, tm=128, tn=128, tl=128):
    """Forward pass of PD: relu(GCN([x; 0_drugs]))[drug rows] ++ |d_feat|."""
    n_prot, in_ch = x.shape
    out_ch = weight.shape[1]
    n_nodes = n_prot + n_drug

    # Graph preprocessing, hoisted out of the kernel: dense normalized adjacency,
    # restricted to the drug rows that PD actually keeps.
    a_norm = _dense_normalized_adjacency(pd_edge_index, n_prot, n_drug, edge_weight)
    a_drugs = a_norm[n_prot:, :]                          # (n_drug, n_nodes)

    # x padded with zero rows for the drug nodes (torch.cat([x, zeros], dim=0)).
    x_nodes = jnp.concatenate(
        [x.astype(jnp.float32), jnp.zeros((n_drug, in_ch), jnp.float32)], axis=0)

    # Pad every dimension to MXU / lane-friendly multiples of 128 so all tiles are
    # (8,128)-aligned and the output store is lane-dense (unmasked vst).
    mp = _round_up(n_drug, tm)
    nl = _round_up(n_nodes, tl)
    kp = _round_up(in_ch, 128)
    cp = _round_up(out_ch, tn)

    a_p = jnp.zeros((mp, nl), jnp.float32).at[:n_drug, :n_nodes].set(a_drugs)
    x_p = jnp.zeros((nl, kp), jnp.float32).at[:n_nodes, :in_ch].set(x_nodes)
    w_p = jnp.zeros((kp, cp), jnp.float32).at[:in_ch, :out_ch].set(
        weight.astype(jnp.float32))
    b_p = jnp.zeros((1, cp), jnp.float32).at[0, :out_ch].set(bias.astype(jnp.float32))

    grid = (mp // tm, cp // tn, nl // tl)

    grid_spec = pltpu.PrefetchScalarGridSpec(
        num_scalar_prefetch=0,
        grid=grid,
        in_specs=[
            pl.BlockSpec((tm, tl), lambda i, j, l: (i, l)),   # A_norm drug-row slab
            pl.BlockSpec((tl, kp), lambda i, j, l: (l, 0)),   # X (full K per block)
            pl.BlockSpec((kp, tn), lambda i, j, l: (0, j)),   # W (full K per block)
            pl.BlockSpec((1, tn), lambda i, j, l: (0, j)),    # bias row
        ],
        out_specs=pl.BlockSpec((tm, tn), lambda i, j, l: (i, j)),
        scratch_shapes=[pltpu.VMEM((tm, tn), jnp.float32)],
    )

    gcn_out = pl.pallas_call(
        _pd_gcn_kernel,
        out_shape=jax.ShapeDtypeStruct((mp, cp), jnp.float32),
        grid_spec=grid_spec,
        compiler_params=pltpu.CompilerParams(
            # i (drug-row tiles) and j (out-feature tiles) are independent -> shard
            # across TensorCores on v7x; node-reduction axis l is last + "arbitrary"
            # so the f32 accumulator stays resident in VMEM.
            dimension_semantics=("parallel", "parallel", "arbitrary"),
            vmem_limit_bytes=32 * 1024 * 1024,   # safe headroom on v5e/v6e/v7x
        ),
    )(a_p, x_p, w_p, b_p)

    drug_out = gcn_out[:n_drug, :out_ch].astype(x.dtype)
    return jnp.concatenate([drug_out, jnp.abs(d_feat).astype(x.dtype)], axis=1)


def _pd_reference(x, pd_edge_index, weight, bias, d_feat, n_drug, edge_weight=None):
    """Pure-JAX mirror of PD.forward (numerical sanity check for the kernel)."""
    n_prot, in_ch = x.shape
    a_norm = _dense_normalized_adjacency(pd_edge_index, n_prot, n_drug, edge_weight)
    x_nodes = jnp.concatenate([x, jnp.zeros((n_drug, in_ch), x.dtype)], axis=0)
    h = jnp.dot(x_nodes, weight, precision=jax.lax.Precision.HIGHEST)
    h = jnp.dot(a_norm, h, precision=jax.lax.Precision.HIGHEST) + bias
    h = jnp.maximum(h[n_prot:, :], 0.0)
    return jnp.concatenate([h, jnp.abs(d_feat)], axis=1)


if __name__ == "__main__":
    key = jax.random.PRNGKey(0)
    k_x, k_w, k_src, k_dst, k_feat = jax.random.split(key, 5)

    # Small shapes consistent with the module.
    protein_dim = 64        # GCN in_channels
    d_dim_prot = 48         # GCN out_channels
    n_drug = 16
    d_dim_feat = 32
    n_prot = 24
    n_edges = 48

    x = jax.random.normal(k_x, (n_prot, protein_dim), dtype=jnp.float32)
    stdv = float(np.sqrt(6.0 / (protein_dim + d_dim_prot)))   # myGCN.reset_parameters
    weight = jax.random.uniform(k_w, (protein_dim, d_dim_prot), jnp.float32,
                                minval=-stdv, maxval=stdv)
    bias = jnp.zeros((d_dim_prot,), jnp.float32)              # bias.data.fill_(0)
    d_feat = jax.random.normal(k_feat, (n_drug, d_dim_feat), dtype=jnp.float32)

    src = jax.random.randint(k_src, (n_edges,), 0, n_prot)    # protein sources
    dst = jax.random.randint(k_dst, (n_edges,), 0, n_drug)    # drug targets
    pd_edge_index = jnp.stack([src, dst], axis=0).astype(jnp.int32)

    out = pd_forward(x, pd_edge_index, weight, bias, d_feat, n_drug=n_drug)
    out = jax.block_until_ready(out)

    ref = _pd_reference(x, pd_edge_index, weight, bias, d_feat, n_drug)
    np.testing.assert_allclose(np.asarray(out), np.asarray(ref), rtol=2e-2, atol=2e-2)
    assert out.shape == (n_drug, d_dim_prot + d_dim_feat)
    print("KERNEL_OK")
</pallas_src>

<mosaic_0001>
module attributes {stable_mosaic.version = 11 : i64} {
  func.func private @main(%arg0: i32) attributes {dimension_semantics = [#tpu.dimension_semantics<core_parallel>], iteration_bounds = array<i64: 2>, tpu.core_type = #tpu.core_type<sc_scalar_subcore>, window_params = []} {
    return
  }
}

module attributes {stable_mosaic.version = 11 : i64} {
  func.func private @main(%arg0: i32) attributes {dimension_semantics = [#tpu.dimension_semantics<core_parallel>], iteration_bounds = array<i64: 2>, tpu.core_type = #tpu.core_type<sc_scalar_subcore>, window_params = []} {
    return
  }
}

module attributes {stable_mosaic.version = 11 : i64} {
  func.func @_pd_gcn_kernel(%arg0: i32, %arg1: i32, %arg2: i32, %arg3: memref<128x128xf32, #tpu.memory_space<vmem>>, %arg4: memref<128x128xf32, #tpu.memory_space<vmem>>, %arg5: memref<128x128xf32, #tpu.memory_space<vmem>>, %arg6: memref<1x128xf32, #tpu.memory_space<vmem>>, %arg7: memref<128x128xf32, #tpu.memory_space<vmem>>, %arg8: memref<128x128xf32, #tpu.memory_space<vmem>>) attributes {dimension_semantics = [#tpu.dimension_semantics<parallel>, #tpu.dimension_semantics<parallel>, #tpu.dimension_semantics<arbitrary>], iteration_bounds = array<i64: 1, 1, 1>, scalar_prefetch = 0 : i64, scratch_operands = 1 : i64, tpu.core_type = #tpu.core_type<tc>, window_params = [{transform_indices = @transform_0, window_bounds = array<i64: 128, 128>}, {transform_indices = @transform_1, window_bounds = array<i64: 128, 128>}, {transform_indices = @transform_2, window_bounds = array<i64: 128, 128>}, {transform_indices = @transform_3, window_bounds = array<i64: 1, 128>}, {transform_indices = @transform_4, window_bounds = array<i64: 128, 128>}]} {
    %c0_i32 = arith.constant 0 : i32
    %0 = arith.cmpi eq, %arg2, %c0_i32 : i32
    %1 = arith.extui %0 : i1 to i32
    %c0_i32_0 = arith.constant 0 : i32
    %2 = arith.cmpi ne, %1, %c0_i32_0 : i32
    scf.if %2 {
      %cst_13 = arith.constant 0.000000e+00 : f32
      %14 = vector.broadcast %cst_13 : f32 to vector<128x128xf32>
      %c0_14 = arith.constant 0 : index
      %c0_15 = arith.constant 0 : index
      %15 = vector.load %arg8[%c0_14, %c0_15] : memref<128x128xf32, #tpu.memory_space<vmem>>, vector<128x128xf32>
      tpu.vector_store %arg8[%c0_14, %c0_15], %14 {strides = array<i32>} : memref<128x128xf32, #tpu.memory_space<vmem>>, vector<128x128xf32>,
    } else {
    }
    %c0 = arith.constant 0 : index
    %c0_1 = arith.constant 0 : index
    %3 = vector.load %arg4[%c0, %c0_1] : memref<128x128xf32, #tpu.memory_space<vmem>>, vector<128x128xf32>
    %c0_2 = arith.constant 0 : index
    %c0_3 = arith.constant 0 : index
    %4 = vector.load %arg5[%c0_2, %c0_3] : memref<128x128xf32, #tpu.memory_space<vmem>>, vector<128x128xf32>
    %cst = arith.constant dense<0.000000e+00> : vector<128x128xf32>
    %5 = tpu.matmul %3, %4, %cst {dimension_numbers = #tpu.dot_dimension_numbers<[1], [0], [0], [1], [0, 0, 1, 1], [], []>} : vector<128x128xf32>, vector<128x128xf32>, vector<128x128xf32> -> vector<128x128xf32>
    %c0_4 = arith.constant 0 : index
    %c0_5 = arith.constant 0 : index
    %6 = vector.load %arg8[%c0_4, %c0_5] : memref<128x128xf32, #tpu.memory_space<vmem>>, vector<128x128xf32>
    %c0_6 = arith.constant 0 : index
    %c0_7 = arith.constant 0 : index
    %7 = vector.load %arg3[%c0_6, %c0_7] : memref<128x128xf32, #tpu.memory_space<vmem>>, vector<128x128xf32>
    %cst_8 = arith.constant dense<0.000000e+00> : vector<128x128xf32>
    %8 = tpu.matmul %7, %5, %cst_8 {dimension_numbers = #tpu.dot_dimension_numbers<[1], [0], [0], [1], [0, 0, 1, 1], [], []>} : vector<128x128xf32>, vector<128x128xf32>, vector<128x128xf32> -> vector<128x128xf32>
    %9 = arith.addf %6, %8 : vector<128x128xf32>
    %c0_9 = arith.constant 0 : index
    %c0_10 = arith.constant 0 : index
    %10 = vector.load %arg8[%c0_9, %c0_10] : memref<128x128xf32, #tpu.memory_space<vmem>>, vector<128x128xf32>
    tpu.vector_store %arg8[%c0_9, %c0_10], %9 {strides = array<i32>} : memref<128x128xf32, #tpu.memory_space<vmem>>, vector<128x128xf32>,
    %c0_i32_11 = arith.constant 0 : i32
    %11 = arith.cmpi eq, %arg2, %c0_i32_11 : i32
    %12 = arith.extui %11 : i1 to i32
    %c0_i32_12 = arith.constant 0 : i32
    %13 = arith.cmpi ne, %12, %c0_i32_12 : i32
    scf.if %13 {
      %c0_13 = arith.constant 0 : index
      %c0_14 = arith.constant 0 : index
      %14 = vector.load %arg8[%c0_13, %c0_14] : memref<128x128xf32, #tpu.memory_space<vmem>>, vector<128x128xf32>
      %c0_15 = arith.constant 0 : index
      %c0_16 = arith.constant 0 : index
      %15 = vector.load %arg6[%c0_15, %c0_16] : memref<1x128xf32, #tpu.memory_space<vmem>>, vector<1x128xf32>
      %16 = vector.broadcast %15 : vector<1x128xf32> to vector<128x128xf32>
      %17 = arith.addf %14, %16 : vector<128x128xf32>
      %cst_17 = arith.constant 0.000000e+00 : f32
      %18 = vector.broadcast %cst_17 : f32 to vector<128x128xf32>
      %19 = arith.maximumf %17, %18 : vector<128x128xf32>
      %c0_18 = arith.constant 0 : index
      %c0_19 = arith.constant 0 : index
      %20 = vector.load %arg7[%c0_18, %c0_19] : memref<128x128xf32, #tpu.memory_space<vmem>>, vector<128x128xf32>
      tpu.vector_store %arg7[%c0_18, %c0_19], %19 {strides = array<i32>} : memref<128x128xf32, #tpu.memory_space<vmem>>, vector<128x128xf32>,
    } else {
    }
    return
  }
  func.func @transform_0(%arg0: i32, %arg1: i32, %arg2: i32) -> (i32, i32) {
    %c0_i32 = arith.constant 0 : i32
    return %arg0, %arg2 : i32, i32
  }
  func.func @transform_1(%arg0: i32, %arg1: i32, %arg2: i32) -> (i32, i32) {
    %c0_i32 = arith.constant 0 : i32
    %c0_i32_0 = arith.constant 0 : i32
    return %arg2, %c0_i32 : i32, i32
  }
  func.func @transform_2(%arg0: i32, %arg1: i32, %arg2: i32) -> (i32, i32) {
    %c0_i32 = arith.constant 0 : i32
    %c0_i32_0 = arith.constant 0 : i32
    return %c0_i32, %arg1 : i32, i32
  }
  func.func @transform_3(%arg0: i32, %arg1: i32, %arg2: i32) -> (i32, i32) {
    %c0_i32 = arith.constant 0 : i32
    %c0_i32_0 = arith.constant 0 : i32
    return %c0_i32, %arg1 : i32, i32
  }
  func.func @transform_4(%arg0: i32, %arg1: i32, %arg2: i32) -> (i32, i32) {
    %c0_i32 = arith.constant 0 : i32
    return %arg0, %arg1 : i32, i32
  }
}

</mosaic_0001>

<bundles_post_ra>
// kernel: pd_forward.1
= control target key start
LH: loop header
LB: loop body
LE: loop exit
PB: predicated region body
PF: predicated region fallthrough
CT: control target
= control target key end

     0   :  { %s962_s2 = inlined_call_operand.vmem [shape: f32[128,128], index: 2, kind: input, shape index: {}]   ;;  %s963_s1 = inlined_call_operand.vmem [shape: f32[128,128], index: 1, kind: input, shape index: {}]   ;;  %s964_s0 = inlined_call_operand.vmem [shape: f32[128,128], index: 0, kind: input, shape index: {}]   ;;  %s965_s3 = inlined_call_operand.vmem [shape: f32[1,128], index: 3, kind: input, shape index: {}]   ;;  %s966_s4 = inlined_call_operand.vmem [shape: f32[128,128], index: 4, kind: output, shape index: {}]  }
   0x1   :  { %v53_v0 = vld [vmem:[%s962_s2] sm:$0xff]  ;;  %v54_v1 = vld [vmem:[%s962_s2 + $0x8] sm:$0xff]  ;;  %v55_v2 = vld [vmem:[%s962_s2 + $0x10] sm:$0xff] }
   0x2   :  { %v678_v3 = vpack.c.bf16 %v54_v1, %v53_v0  ;;  %v56_v4 = vld [vmem:[%s962_s2 + $0x18] sm:$0xff]  ;;  %v57_v6 = vld [vmem:[%s962_s2 + $0x20] sm:$0xff]  ;;  %v58_v7 = vld [vmem:[%s962_s2 + $0x28] sm:$0xff] }
   0x3   :  { %v682_v5 = vpack.c.bf16 %v56_v4, %v55_v2  ;;  %v686_v8 = vpack.c.bf16 %v58_v7, %v57_v6  ;;  %v37_v9 = vld [vmem:[%s963_s1] sm:$0xff]  ;;  %v59_v10 = vld [vmem:[%s962_s2 + $0x30] sm:$0xff]  ;;  %v60_v11 = vld [vmem:[%s962_s2 + $0x38] sm:$0xff] }
   0x4   :  { %679 = vmatprep.subr.bf16.mxu0 %v678_v3  ;;  %598 = vmatprep.mubr.f32.mxu0 %v37_v9  ;;  %v690_v12 = vpack.c.bf16 %v60_v11, %v59_v10  ;;  %v61_v13 = vld [vmem:[%s962_s2 + $0x40] sm:$0xff]  ;;  %v62_v14 = vld [vmem:[%s962_s2 + $0x48] sm:$0xff]  ;;  %v63_v16 = vld [vmem:[%s962_s2 + $0x50] sm:$0xff] }
   0x5   :  { %681 = vmatpush3.bf16.msra.mxu0 %v678_v3  ;;  %v694_v15 = vpack.c.bf16 %v62_v14, %v61_v13  ;;  %v64_v17 = vld [vmem:[%s962_s2 + $0x58] sm:$0xff]  ;;  %v65_v19 = vld [vmem:[%s962_s2 + $0x60] sm:$0xff]  ;;  %v66_v20 = vld [vmem:[%s962_s2 + $0x68] sm:$0xff] }
   0x6   :  { %683 = vmatprep.subr.bf16.mxu0 %v682_v5  ;;  %v698_v18 = vpack.c.bf16 %v64_v17, %v63_v16  ;;  %v702_v21 = vpack.c.bf16 %v66_v20, %v65_v19  ;;  %v67_v22 = vld [vmem:[%s962_s2 + $0x70] sm:$0xff]  ;;  %v68_v23 = vld [vmem:[%s962_s2 + $0x78] sm:$0xff]  ;;  %v38_v25 = vld [vmem:[%s963_s1 + $0x8] sm:$0xff] }
   0x7   :  { %v706_v24 = vpack.c.bf16 %v68_v23, %v67_v22  ;;  %v39_v26 = vld [vmem:[%s963_s1 + $0x10] sm:$0xff]  ;;  %v40_v27 = vld [vmem:[%s963_s1 + $0x18] sm:$0xff]  ;;  %v41_v28 = vld [vmem:[%s963_s1 + $0x20] sm:$0xff] }
   0x8   :  { %v42_v29 = vld [vmem:[%s963_s1 + $0x28] sm:$0xff]  ;;  %v43_v30 = vld [vmem:[%s963_s1 + $0x30] sm:$0xff]  ;;  %v44_v31 = vld [vmem:[%s963_s1 + $0x38] sm:$0xff] }
   0x9   :  { %685 = vmatpush3.bf16.msra.mxu0 %v682_v5  ;;  %v45_v32 = vld [vmem:[%s963_s1 + $0x40] sm:$0xff]  ;;  %v46_v33 = vld [vmem:[%s963_s1 + $0x48] sm:$0xff]  ;;  %v47_v34 = vld [vmem:[%s963_s1 + $0x50] sm:$0xff] }
   0xa   :  { %687 = vmatprep.subr.bf16.mxu0 %v686_v8  ;;  %v48_v35 = vld [vmem:[%s963_s1 + $0x58] sm:$0xff]  ;;  %v49_v36 = vld [vmem:[%s963_s1 + $0x60] sm:$0xff]  ;;  %v50_v37 = vld [vmem:[%s963_s1 + $0x68] sm:$0xff] }
   0xb   :  { %v51_v38 = vld [vmem:[%s963_s1 + $0x70] sm:$0xff]  ;;  %v52_v39 = vld [vmem:[%s963_s1 + $0x78] sm:$0xff]  ;;  %v230_v40 = vld [vmem:[%s964_s0] sm:$0xff] }
   0xc   :  { %654 = vmatprep.mubr.f32.mxu1 %v230_v40  ;;  %v231_v1 = vld [vmem:[%s964_s0 + $0x8] sm:$0xff]  ;;  %v232_v2 = vld [vmem:[%s964_s0 + $0x10] sm:$0xff]  ;;  %v233_v3 = vld [vmem:[%s964_s0 + $0x18] sm:$0xff] }
   0xd   :  { %689 = vmatpush3.bf16.msra.mxu0 %v686_v8  ;;  %v234_v4 = vld [vmem:[%s964_s0 + $0x20] sm:$0xff]  ;;  %v235_v5 = vld [vmem:[%s964_s0 + $0x28] sm:$0xff]  ;;  %v236_v6 = vld [vmem:[%s964_s0 + $0x30] sm:$0xff] }
   0xe   :  { %691 = vmatprep.subr.bf16.mxu0 %v690_v12  ;;  %v237_v7 = vld [vmem:[%s964_s0 + $0x38] sm:$0xff]  ;;  %v238_v8 = vld [vmem:[%s964_s0 + $0x40] sm:$0xff]  ;;  %v239_v9 = vld [vmem:[%s964_s0 + $0x48] sm:$0xff] }
   0xf   :  { %v240_v10 = vld [vmem:[%s964_s0 + $0x50] sm:$0xff]  ;;  %v241_v11 = vld [vmem:[%s964_s0 + $0x58] sm:$0xff]  ;;  %v243_v13 = vld [vmem:[%s964_s0 + $0x68] sm:$0xff] }
  0x10   :  { %v244_v14 = vld [vmem:[%s964_s0 + $0x70] sm:$0xff]  ;;  %v501_v16 = vld [vmem:[%s965_s3] ss:$0 sm:$0xff] }
  0x11   :  { %693 = vmatpush3.bf16.msra.mxu0 %v690_v12  ;;  %v242_v12 = vld [vmem:[%s964_s0 + $0x60] sm:$0xff] }
  0x12   :  { %695 = vmatprep.subr.bf16.mxu0 %v694_v15 }
  0x15   :  { %697 = vmatpush3.bf16.msra.mxu0 %v694_v15  ;;  %v245_v15 = vld [vmem:[%s964_s0 + $0x78] sm:$0xff] }
  0x16   :  { %699 = vmatprep.subr.bf16.mxu0 %v698_v18 }
  0x19   :  { %701 = vmatpush3.bf16.msra.mxu0 %v698_v18 }
  0x1a   :  { %703 = vmatprep.subr.bf16.mxu0 %v702_v21 }
  0x1d   :  { %705 = vmatpush3.bf16.msra.mxu0 %v702_v21 }
  0x1e   :  { %707 = vmatprep.subr.bf16.mxu0 %v706_v24 }
  0x21   :  { %709 = vmatpush3.bf16.msra.mxu0 %v706_v24 }
  0x24   :  { %599 = vmatmul.mubr.f32.vlgmr.msra.gmra.mrb[0].mxu0 %v38_v25 }
  0x25   :  { %601 = vmatprep.mubr.f32.mxu0 %v39_v26 }
  0x28   :  { %602 = vmatmul.mubr.f32.gmra.mrb[2].mxu0 %v40_v27 }
  0x29   :  { %604 = vmatprep.mubr.f32.mxu0 %v41_v28 }
  0x2c   :  { %605 = vmatmul.mubr.f32.gmra.mrb[4].mxu0 %v42_v29 }
  0x2d   :  { %607 = vmatprep.mubr.f32.mxu0 %v43_v30 }
  0x30   :  { %608 = vmatmul.mubr.f32.gmra.mrb[6].mxu0 %v44_v31 }
  0x31   :  { %610 = vmatprep.mubr.f32.mxu0 %v45_v32 }
  0x34   :  { %611 = vmatmul.mubr.f32.gmra.mrb[8].mxu0 %v46_v33 }
  0x35   :  { %613 = vmatprep.mubr.f32.mxu0 %v47_v34 }
  0x38   :  { %614 = vmatmul.mubr.f32.gmra.mrb[10].mxu0 %v48_v35 }
  0x39   :  { %616 = vmatprep.mubr.f32.mxu0 %v49_v36 }
  0x3c   :  { %617 = vmatmul.mubr.f32.gmra.mrb[12].mxu0 %v50_v37 }
  0x3d   :  { %619 = vmatprep.mubr.f32.mxu0 %v51_v38 }
  0x40   :  { %620 = vmatmul.mubr.f32.gmra.mrb[14].mxu0 %v52_v39 }
  0xf7   :  { %v600_v41 = vpop.f32.mrb[0].mxu0 }
  0xf8   :  { %v135_v42 = vpop.f32.mrb[1].mxu0 }
  0xf9   :  { %v710_v43 = vpack.c.bf16 %v600_v41, %v135_v42 }
  0xfb   :  { %v603_v44 = vpop.f32.mrb[2].mxu0  ;;  %711 = vmatprep.subr.bf16.mxu1 %v710_v43 }
  0xfc   :  { %v145_v45 = vpop.f32.mrb[3].mxu0  ;;  %713 = vmatpush3.bf16.msra.mxu1 %v710_v43 }
  0xfd   :  { %v714_v46 = vpack.c.bf16 %v603_v44, %v145_v45 }
  0xff   :  { %v606_v47 = vpop.f32.mrb[4].mxu0  ;;  %715 = vmatprep.subr.bf16.mxu1 %v714_v46 }
 0x100   :  { %v155_v48 = vpop.f32.mrb[5].mxu0  ;;  %717 = vmatpush3.bf16.msra.mxu1 %v714_v46 }
 0x101   :  { %v718_v49 = vpack.c.bf16 %v606_v47, %v155_v48 }
 0x103   :  { %v609_v50 = vpop.f32.mrb[6].mxu0  ;;  %719 = vmatprep.subr.bf16.mxu1 %v718_v49 }
 0x104   :  { %v165_v51 = vpop.f32.mrb[7].mxu0  ;;  %721 = vmatpush3.bf16.msra.mxu1 %v718_v49 }
 0x105   :  { %v722_v52 = vpack.c.bf16 %v609_v50, %v165_v51 }
 0x107   :  { %v612_v53 = vpop.f32.mrb[8].mxu0  ;;  %723 = vmatprep.subr.bf16.mxu1 %v722_v52 }
 0x108   :  { %v175_v54 = vpop.f32.mrb[9].mxu0  ;;  %725 = vmatpush3.bf16.msra.mxu1 %v722_v52 }
 0x109   :  { %v726_v55 = vpack.c.bf16 %v612_v53, %v175_v54 }
 0x10b   :  { %v615_v56 = vpop.f32.mrb[10].mxu0  ;;  %727 = vmatprep.subr.bf16.mxu1 %v726_v55 }
 0x10c   :  { %v185_v57 = vpop.f32.mrb[11].mxu0  ;;  %729 = vmatpush3.bf16.msra.mxu1 %v726_v55 }
 0x10d   :  { %v730_v58 = vpack.c.bf16 %v615_v56, %v185_v57 }
 0x10f   :  { %v618_v59 = vpop.f32.mrb[12].mxu0  ;;  %731 = vmatprep.subr.bf16.mxu1 %v730_v58 }
 0x110   :  { %v195_v60 = vpop.f32.mrb[13].mxu0  ;;  %733 = vmatpush3.bf16.msra.mxu1 %v730_v58 }
 0x111   :  { %v734_v61 = vpack.c.bf16 %v618_v59, %v195_v60 }
 0x113   :  { %v621_v62 = vpop.f32.mrb[14].mxu0  ;;  %735 = vmatprep.subr.bf16.mxu1 %v734_v61 }
 0x114   :  { %v205_v63 = vpop.f32.mrb[15].mxu0  ;;  %737 = vmatpush3.bf16.msra.mxu1 %v734_v61 }
 0x115   :  { %v738_v0 = vpack.c.bf16 %v621_v62, %v205_v63 }
 0x117   :  { %739 = vmatprep.subr.bf16.mxu1 %v738_v0 }
 0x118   :  { %741 = vmatpush3.bf16.msra.mxu1 %v738_v0 }
 0x11b   :  { %655 = vmatmul.mubr.f32.vlgmr.msra.gmra.mrb[0].mxu1 %v231_v1 }
 0x11c   :  { %657 = vmatprep.mubr.f32.mxu1 %v232_v2 }
 0x11f   :  { %658 = vmatmul.mubr.f32.gmra.mrb[2].mxu1 %v233_v3 }
 0x120   :  { %660 = vmatprep.mubr.f32.mxu1 %v234_v4 }
 0x123   :  { %661 = vmatmul.mubr.f32.gmra.mrb[4].mxu1 %v235_v5 }
 0x124   :  { %663 = vmatprep.mubr.f32.mxu1 %v236_v6 }
 0x127   :  { %664 = vmatmul.mubr.f32.gmra.mrb[6].mxu1 %v237_v7 }
 0x128   :  { %666 = vmatprep.mubr.f32.mxu1 %v238_v8 }
 0x12b   :  { %667 = vmatmul.mubr.f32.gmra.mrb[8].mxu1 %v239_v9 }
 0x12c   :  { %669 = vmatprep.mubr.f32.mxu1 %v240_v10 }
 0x12f   :  { %670 = vmatmul.mubr.f32.gmra.mrb[10].mxu1 %v241_v11 }
 0x130   :  { %672 = vmatprep.mubr.f32.mxu1 %v242_v12 }
 0x133   :  { %673 = vmatmul.mubr.f32.gmra.mrb[12].mxu1 %v243_v13 }
 0x134   :  { %675 = vmatprep.mubr.f32.mxu1 %v244_v14 }
 0x137   :  { %676 = vmatmul.mubr.f32.gmra.mrb[14].mxu1 %v245_v15 }
 0x1ee   :  { %v656_v17 = vpop.f32.mrb[0].mxu1 }
 0x1ef   :  { %v450_v18 = vadd.f32 %v656_v17, %v501_v16  ;;  %v312_v19 = vpop.f32.mrb[1].mxu1 }
 0x1f0   :  { %v449_v20 = vadd.f32 %v501_v16, %v312_v19 }
 0x1f1   :  { %v466_v21 = vmax.f32 %v450_v18, 0.0 }
 0x1f2   :  { %v465_v22 = vmax.f32 %v449_v20, 0.0  ;;  %v659_v23 = vpop.f32.mrb[2].mxu1 }
 0x1f3   :  { %482 = vst [vmem:[%s966_s4 + $0x8] sm:$0xff] %v466_v21  ;;  %v452_v24 = vadd.f32 %v659_v23, %v501_v16  ;;  %v322_v25 = vpop.f32.mrb[3].mxu1 }
 0x1f4   :  { %481 = vst [vmem:[%s966_s4] sm:$0xff] %v465_v22  ;;  %v451_v26 = vadd.f32 %v501_v16, %v322_v25 }
 0x1f5   :  { %v468_v27 = vmax.f32 %v452_v24, 0.0 }
 0x1f6   :  { %v467_v28 = vmax.f32 %v451_v26, 0.0  ;;  %v662_v29 = vpop.f32.mrb[4].mxu1 }
 0x1f7   :  { %484 = vst [vmem:[%s966_s4 + $0x18] sm:$0xff] %v468_v27  ;;  %v454_v30 = vadd.f32 %v662_v29, %v501_v16  ;;  %v332_v31 = vpop.f32.mrb[5].mxu1 }
 0x1f8   :  { %483 = vst [vmem:[%s966_s4 + $0x10] sm:$0xff] %v467_v28  ;;  %v453_v32 = vadd.f32 %v501_v16, %v332_v31 }
 0x1f9   :  { %v470_v33 = vmax.f32 %v454_v30, 0.0 }
 0x1fa   :  { %v469_v34 = vmax.f32 %v453_v32, 0.0  ;;  %v665_v35 = vpop.f32.mrb[6].mxu1 }
 0x1fb   :  { %486 = vst [vmem:[%s966_s4 + $0x28] sm:$0xff] %v470_v33  ;;  %v456_v36 = vadd.f32 %v665_v35, %v501_v16  ;;  %v342_v37 = vpop.f32.mrb[7].mxu1 }
 0x1fc   :  { %485 = vst [vmem:[%s966_s4 + $0x20] sm:$0xff] %v469_v34  ;;  %v455_v38 = vadd.f32 %v501_v16, %v342_v37 }
 0x1fd   :  { %v472_v39 = vmax.f32 %v456_v36, 0.0 }
 0x1fe   :  { %v471_v40 = vmax.f32 %v455_v38, 0.0  ;;  %v668_v41 = vpop.f32.mrb[8].mxu1 }
 0x1ff   :  { %488 = vst [vmem:[%s966_s4 + $0x38] sm:$0xff] %v472_v39  ;;  %v458_v42 = vadd.f32 %v668_v41, %v501_v16  ;;  %v352_v43 = vpop.f32.mrb[9].mxu1 }
 0x200   :  { %487 = vst [vmem:[%s966_s4 + $0x30] sm:$0xff] %v471_v40  ;;  %v457_v44 = vadd.f32 %v501_v16, %v352_v43 }
 0x201   :  { %v474_v45 = vmax.f32 %v458_v42, 0.0 }
 0x202   :  { %v473_v46 = vmax.f32 %v457_v44, 0.0  ;;  %v671_v47 = vpop.f32.mrb[10].mxu1 }
 0x203   :  { %490 = vst [vmem:[%s966_s4 + $0x48] sm:$0xff] %v474_v45  ;;  %v460_v48 = vadd.f32 %v671_v47, %v501_v16  ;;  %v362_v49 = vpop.f32.mrb[11].mxu1 }
 0x204   :  { %489 = vst [vmem:[%s966_s4 + $0x40] sm:$0xff] %v473_v46  ;;  %v459_v50 = vadd.f32 %v501_v16, %v362_v49 }
 0x205   :  { %v476_v51 = vmax.f32 %v460_v48, 0.0 }
 0x206   :  { %v475_v52 = vmax.f32 %v459_v50, 0.0  ;;  %v674_v53 = vpop.f32.mrb[12].mxu1 }
 0x207   :  { %492 = vst [vmem:[%s966_s4 + $0x58] sm:$0xff] %v476_v51  ;;  %v462_v54 = vadd.f32 %v674_v53, %v501_v16  ;;  %v372_v55 = vpop.f32.mrb[13].mxu1 }
 0x208   :  { %491 = vst [vmem:[%s966_s4 + $0x50] sm:$0xff] %v475_v52  ;;  %v461_v56 = vadd.f32 %v501_v16, %v372_v55 }
 0x209   :  { %v478_v57 = vmax.f32 %v462_v54, 0.0 }
 0x20a   :  { %v477_v58 = vmax.f32 %v461_v56, 0.0  ;;  %v677_v59 = vpop.f32.mrb[14].mxu1 }
 0x20b   :  { %494 = vst [vmem:[%s966_s4 + $0x68] sm:$0xff] %v478_v57  ;;  %v464_v60 = vadd.f32 %v677_v59, %v501_v16  ;;  %v382_v61 = vpop.f32.mrb[15].mxu1 }
 0x20c   :  { %493 = vst [vmem:[%s966_s4 + $0x60] sm:$0xff] %v477_v58  ;;  %v463_v62 = vadd.f32 %v501_v16, %v382_v61 }
 0x20d   :  { %v480_v63 = vmax.f32 %v464_v60, 0.0 }
 0x20e   :  { %v479_v0 = vmax.f32 %v463_v62, 0.0 }
 0x20f   :  { %496 = vst [vmem:[%s966_s4 + $0x78] sm:$0xff] %v480_v63 }
 0x210   :  { %495 = vst [vmem:[%s966_s4 + $0x70] sm:$0xff] %v479_v0 }

</bundles_post_ra>
